<compile_context>
chip_gen: v7x
topology: tpu7x:2x2x1
jax: 0.10.0
libtpu: 0.0.40
codegen_flags: <defaults>
</compile_context>

<pallas_src>
import functools

import jax
import jax.numpy as jnp
from jax import lax
from jax.experimental import pallas as pl
from jax.experimental.pallas import tpu as pltpu


def _round_up(x, m):
    return ((x + m - 1) // m) * m


def _cdiv(a, b):
    return -(-a // b)


def _tpu_vmem_and_cores():
    """Best-effort per-generation VMEM capacity + TensorCore count (safe fallbacks)."""
    cap, cores = None, 1
    try:
        info = pltpu.get_tpu_info()
        cap = getattr(info, "vmem_capacity_bytes", None)
        cores = (getattr(info, "num_cores", None)
                 or getattr(info, "tensorcores_per_chip", None) or 1)
    except Exception:
        pass
    try:
        cores = max(int(cores or 1), int(getattr(jax.devices()[0], "num_cores", 1) or 1))
    except Exception:
        cores = int(cores or 1)
    if not cap:
        cap = 64 * 1024 * 1024  # conservative: v7x per-TC physical VMEM
    return int(cap), int(cores)


def _choose_tiles(B, IN, OUT, include_bn, x_item, w_item, out_item, budget, num_cores):
    block_b = _round_up(max(min(B, 512), 1), 16)   # 16-row alignment (bf16 sublane packing)
    if include_bn:
        # LayerNorm needs the full OUT row resident in one tile.
        # TODO(synk): two-pass LN (stats pass + apply pass) for extreme OUT on v7x.
        block_n = _round_up(OUT, 128)
    else:
        block_n = min(_round_up(OUT, 128), 2048)

    n_vec = 3 if include_bn else 1  # bias (+gamma, beta), each sublane-padded to 8 rows

    def max_k(bb, bn):
        fixed = 2 * bb * bn * out_item + bb * bn * 4 + n_vec * 2 * 8 * bn * 4
        per_k = 2 * (bb * x_item + bn * w_item)    # double-buffered x and W tiles
        return (budget - fixed) // per_k

    # Shrink block_n (then block_b) until at least one 128-wide K slice fits the budget.
    while max_k(block_b, block_n) < min(IN, 128):
        if not include_bn and block_n > 128:
            block_n = max(128, _round_up(block_n // 2, 128))
        elif block_b > 16:
            block_b = max(16, _round_up(block_b // 2, 16))
        else:
            break

    mk = max_k(block_b, block_n)
    if mk >= IN:
        block_k = IN                 # no K loop, no IN padding
    else:
        bk_max = max(128, (int(mk) // 128) * 128)
        n_k = _cdiv(IN, bk_max)
        block_k = _round_up(_cdiv(IN, n_k), 128)   # balance K slices, minimal padding

    # Megacore: split the batch only when >=2 TensorCores would otherwise see a single
    # parallel grid point. Single-TC chips (v5e/v6e) keep one large batch tile.
    n_i = _cdiv(B, block_b)
    n_j = _cdiv(OUT, block_n)
    if num_cores >= 2 and n_i == 1 and n_j == 1 and B >= 256:
        block_b = _round_up(_cdiv(B, 2), 16)

    return block_b, block_n, block_k


def _deeplifting_block_kernel(*refs, include_bn, activation, single_k, ln_valid,
                              compute_dtype, eps=1e-5):
    it = iter(refs)
    x_ref = next(it)                                      # (block_b, block_k) caller dtype
    w_ref = next(it)                                      # (block_n, block_k) native [OUT, IN]
    b_ref = next(it)                                      # (1, block_n) f32
    sp_ref = next(it) if activation == 'sine' else None   # (2,) f32 SMEM: [scale, shift]
    gamma_ref = next(it) if include_bn else None          # (1, block_n) f32
    beta_ref = next(it) if include_bn else None           # (1, block_n) f32
    o_ref = next(it)                                      # (block_b, block_n)
    acc_ref = None if single_k else next(it)              # (block_b, block_n) f32 scratch

    # Cast the VMEM tiles (not the HBM arrays) to the MXU compute dtype: native bf16
    # MXU path, f32 accumulation, no extra HBM pass for the cast.
    xt = x_ref[...].astype(compute_dtype)
    wt = w_ref[...].astype(compute_dtype)
    # TODO(synk): verify via bundle dump that this NT contraction does not insert a
    # per-tile XLU transpose of W; if it does, pre-transpose W to [IN, OUT] off the hot path.
    part = lax.dot_general(
        xt, wt, dimension_numbers=(((1,), (1,)), ((), ())),
        preferred_element_type=jnp.float32,
    )

    def _epilogue(acc):
        y = acc + b_ref[...]
        if include_bn:
            if ln_valid is not None:
                # OUT is lane-padded to 128; mask the padded columns out of the stats.
                cols = lax.broadcasted_iota(jnp.int32, y.shape, 1)
                mask = (cols < ln_valid).astype(jnp.float32)
                inv_n = 1.0 / float(ln_valid)
                mu = jnp.sum(y * mask, axis=-1, keepdims=True) * inv_n
                d = (y - mu) * mask
                var = jnp.sum(d * d, axis=-1, keepdims=True) * inv_n
            else:
                mu = jnp.mean(y, axis=-1, keepdims=True)
                d = y - mu
                var = jnp.mean(d * d, axis=-1, keepdims=True)
            y = (y - mu) * lax.rsqrt(var + eps)
            y = y * gamma_ref[...] + beta_ref[...]
        if activation == 'sine':
            y = jnp.sin((y - sp_ref[1]) * sp_ref[0])
        elif activation == 'relu':
            y = jnp.maximum(y, 0.0)
        elif activation == 'leaky_relu':
            y = jnp.where(y >= 0.0, y, 0.01 * y)
        # else: identity (matches the PyTorch early return)
        o_ref[...] = y.astype(o_ref.dtype)

    if single_k:
        _epilogue(part)
    else:
        k = pl.program_id(2)

        @pl.when(k == 0)
        def _():
            acc_ref[...] = jnp.zeros_like(acc_ref)

        acc_ref[...] += part

        @pl.when(k == pl.num_programs(2) - 1)
        def _():
            _epilogue(acc_ref[...])


def deeplifting_block(
    x, w, b, sin_scale=None, sin_shift=None, ln_gamma=None, ln_beta=None,
    *, include_bn=False, activation='sine',
    compute_dtype=jnp.bfloat16, out_dtype=jnp.float32,
    block_b=None, block_n=None, block_k=None,
):
    """x: [B, IN]; w: [OUT, IN] (native PyTorch layout); returns [B, OUT] out_dtype."""
    B, IN = x.shape
    OUT, IN_w = w.shape
    assert IN == IN_w

    x_item = jnp.dtype(x.dtype).itemsize
    w_item = jnp.dtype(w.dtype).itemsize
    out_item = jnp.dtype(out_dtype).itemsize

    vmem_cap, num_cores = _tpu_vmem_and_cores()
    budget = int(0.60 * vmem_cap)   # double-buffered working set; leaves Mosaic headroom

    bb, bn, bk = _choose_tiles(B, IN, OUT, include_bn, x_item, w_item, out_item,
                               budget, num_cores)
    block_b = block_b or bb
    block_n = block_n or bn
    block_k = block_k or bk
    if include_bn:
        block_n = _round_up(OUT, 128)           # full row resident for LayerNorm

    B_pad = _round_up(B, block_b)
    OUT_pad = _round_up(OUT, block_n)           # multiple of 128 -> lane-dense stores
    IN_pad = _round_up(IN, block_k)
    n_i, n_j, n_k = B_pad // block_b, OUT_pad // block_n, IN_pad // block_k
    single_k = n_k == 1

    # ---- wrapper-side padding (padded rows/cols are zero and sliced off) ----
    if B_pad != B or IN_pad != IN:
        x = jnp.pad(x, ((0, B_pad - B), (0, IN_pad - IN)))
    if OUT_pad != OUT or IN_pad != IN:
        w = jnp.pad(w, ((0, OUT_pad - OUT), (0, IN_pad - IN)))
    if OUT_pad != OUT:
        b = jnp.pad(b, (0, OUT_pad - OUT))
    b2 = b.reshape(1, OUT_pad).astype(jnp.float32)

    # Grid order: with no K loop, put the larger-traffic operand on the outer axis so
    # the smaller one is the resident / reused operand (fetched once).
    bytes_x = B_pad * IN_pad * x_item
    bytes_w = OUT_pad * IN_pad * w_item
    if single_k:
        batch_major = (bytes_x + n_i * bytes_w) <= (bytes_w + n_j * bytes_x)
    else:
        batch_major = True

    if batch_major:
        grid = (n_i, n_j, n_k)
        x_map = lambda a, c, k: (a, k)
        w_map = lambda a, c, k: (c, k)
        v_map = lambda a, c, k: (0, c)
        o_map = lambda a, c, k: (a, c)
    else:
        grid = (n_j, n_i, n_k)
        x_map = lambda a, c, k: (c, k)
        w_map = lambda a, c, k: (a, k)
        v_map = lambda a, c, k: (0, a)
        o_map = lambda a, c, k: (c, a)

    in_specs = [
        pl.BlockSpec((block_b, block_k), x_map),     # x tile (caller dtype)
        pl.BlockSpec((block_n, block_k), w_map),     # W tile, native [OUT, IN] layout
        pl.BlockSpec((1, block_n), v_map),           # bias
    ]
    args = [x, w, b2]

    if activation == 'sine':
        scale = jnp.asarray(1.0 if sin_scale is None else sin_scale, jnp.float32).reshape(())
        shift = jnp.asarray(0.0 if sin_shift is None else sin_shift, jnp.float32).reshape(())
        in_specs.append(pl.BlockSpec(memory_space=pltpu.MemorySpace.SMEM))
        args.append(jnp.stack([scale, shift]))

    if include_bn:
        g = (jnp.ones((OUT,), jnp.float32) if ln_gamma is None
             else jnp.asarray(ln_gamma, jnp.float32).reshape(OUT))
        be = (jnp.zeros((OUT,), jnp.float32) if ln_beta is None
              else jnp.asarray(ln_beta, jnp.float32).reshape(OUT))
        if OUT_pad != OUT:
            g = jnp.pad(g, (0, OUT_pad - OUT))
            be = jnp.pad(be, (0, OUT_pad - OUT))
        in_specs += [pl.BlockSpec((1, block_n), v_map),
                     pl.BlockSpec((1, block_n), v_map)]
        args += [g.reshape(1, OUT_pad), be.reshape(1, OUT_pad)]

    scratch_shapes = [] if single_k else [pltpu.VMEM((block_b, block_n), jnp.float32)]

    # ---- VMEM accounting + per-generation limit (never request the whole VMEM) ----
    n_vec = 3 if include_bn else 1
    need = (2 * (block_b * block_k * x_item + block_n * block_k * w_item)
            + 2 * block_b * block_n * out_item
            + (0 if single_k else block_b * block_n * 4)
            + n_vec * 2 * 8 * block_n * 4)
    vmem_limit = int(min(0.78 * vmem_cap, max(1.5 * need, 16 * 1024 * 1024)))

    if single_k:
        x_reads = 1 if batch_major else n_j
        w_reads = n_i if batch_major else 1
    else:
        x_reads, w_reads = n_j, n_i
    cost = pl.CostEstimate(
        flops=2 * B_pad * IN_pad * OUT_pad,
        transcendentals=B_pad * OUT_pad if activation == 'sine' else 0,
        bytes_accessed=int(x_reads * bytes_x + w_reads * bytes_w
                           + B_pad * OUT_pad * out_item),
    )

    kernel = functools.partial(
        _deeplifting_block_kernel,
        include_bn=include_bn, activation=activation, single_k=single_k,
        ln_valid=(OUT if (include_bn and OUT_pad != OUT) else None),
        compute_dtype=compute_dtype,
    )

    out = pl.pallas_call(
        kernel,
        out_shape=jax.ShapeDtypeStruct((B_pad, OUT_pad), out_dtype),
        grid_spec=pltpu.PrefetchScalarGridSpec(
            num_scalar_prefetch=0,
            grid=grid,
            in_specs=in_specs,
            out_specs=pl.BlockSpec((block_b, block_n), o_map),
            scratch_shapes=scratch_shapes,
        ),
        compiler_params=pltpu.CompilerParams(
            dimension_semantics=("parallel", "parallel", "arbitrary"),
            vmem_limit_bytes=vmem_limit,
        ),
        cost_estimate=cost,
    )(*args)

    if B_pad != B or OUT_pad != OUT:
        out = out[:B, :OUT]
    return out


def _reference(x, w, b, sin_scale, sin_shift, ln_gamma, ln_beta,
               include_bn=False, activation='sine', eps=1e-5):
    y = x @ w.T + b
    if include_bn:
        mu = jnp.mean(y, axis=-1, keepdims=True)
        var = jnp.mean((y - mu) ** 2, axis=-1, keepdims=True)
        y = (y - mu) / jnp.sqrt(var + eps) * ln_gamma + ln_beta
    if activation == 'sine':
        y = jnp.sin((y - sin_shift) * sin_scale)
    elif activation == 'relu':
        y = jnp.maximum(y, 0.0)
    elif activation == 'leaky_relu':
        y = jnp.where(y >= 0, y, 0.01 * y)
    return y


if __name__ == "__main__":
    key = jax.random.PRNGKey(0)
    B, IN, OUT = 16, 32, 128
    k_x, k_w, k_b, k_w2, k_b2, k_g = jax.random.split(key, 6)

    x = jax.random.normal(k_x, (B, IN), dtype=jnp.float32)
    w = jax.random.normal(k_w, (OUT, IN), dtype=jnp.float32) / jnp.sqrt(IN)
    b = jax.random.normal(k_b, (OUT,), dtype=jnp.float32) * 0.01
    sin_scale = jnp.ones((1,), jnp.float32)    # SinActivation.scale init
    sin_shift = jnp.zeros((1,), jnp.float32)   # SinActivation.shift init
    ones, zeros = jnp.ones((OUT,), jnp.float32), jnp.zeros((OUT,), jnp.float32)

    # 1) Default module config (sine, no LN); f32 matmul operands for a tight check.
    out = jax.block_until_ready(deeplifting_block(
        x, w, b, sin_scale, sin_shift, None, None,
        include_bn=False, activation='sine', compute_dtype=jnp.float32))
    ref = _reference(x, w, b, sin_scale, sin_shift, ones, zeros,
                     include_bn=False, activation='sine')
    assert out.shape == (B, OUT)
    assert jnp.max(jnp.abs(out - ref)) < 1e-4

    # 2) include_bn=True with OUT=200: exercises 128-lane OUT padding + masked LayerNorm.
    OUT2 = 200
    w2 = jax.random.normal(k_w2, (OUT2, IN), jnp.float32) / jnp.sqrt(IN)
    b2 = jax.random.normal(k_b2, (OUT2,), jnp.float32) * 0.01
    g2 = 1.0 + 0.1 * jax.random.normal(k_g, (OUT2,), jnp.float32)
    be2 = 0.05 * jnp.ones((OUT2,), jnp.float32)
    out_bn = jax.block_until_ready(deeplifting_block(
        x, w2, b2, sin_scale, sin_shift, g2, be2,
        include_bn=True, activation='sine', compute_dtype=jnp.float32))
    ref_bn = _reference(x, w2, b2, sin_scale, sin_shift, g2, be2,
                        include_bn=True, activation='sine')
    assert out_bn.shape == (B, OUT2)
    assert jnp.max(jnp.abs(out_bn - ref_bn)) < 1e-4

    # 3) Non-multiple batch + relu (padding/slicing; no sin params passed to the kernel).
    x_odd = jax.random.normal(k_x, (10, IN), jnp.float32)
    out_r = jax.block_until_ready(deeplifting_block(
        x_odd, w, b, None, None, None, None,
        include_bn=False, activation='relu', compute_dtype=jnp.float32))
    ref_r = _reference(x_odd, w, b, sin_scale, sin_shift, ones, zeros,
                       include_bn=False, activation='relu')
    assert out_r.shape == (10, OUT)
    assert jnp.max(jnp.abs(out_r - ref_r)) < 1e-4

    # 4) Default compute_dtype (bf16 MXU operands cast in-kernel, f32 accumulation).
    out_bf = jax.block_until_ready(deeplifting_block(
        x, w, b, sin_scale, sin_shift, None, None,
        include_bn=False, activation='sine'))
    assert jnp.max(jnp.abs(out_bf - ref)) < 5e-2

    # 5) leaky_relu path.
    out_l = jax.block_until_ready(deeplifting_block(
        x, w, b, None, None, None, None,
        include_bn=False, activation='leaky_relu', compute_dtype=jnp.float32))
    ref_l = _reference(x, w, b, sin_scale, sin_shift, ones, zeros,
                       include_bn=False, activation='leaky_relu')
    assert jnp.max(jnp.abs(out_l - ref_l)) < 1e-4

    print("KERNEL_OK")
</pallas_src>

<mosaic_0001>
module attributes {stable_mosaic.version = 11 : i64} {
  func.func @_deeplifting_block_kernel(%arg0: i32, %arg1: i32, %arg2: i32, %arg3: memref<16x32xf32, #tpu.memory_space<vmem>>, %arg4: memref<128x32xf32, #tpu.memory_space<vmem>>, %arg5: memref<1x128xf32, #tpu.memory_space<vmem>>, %arg6: memref<2xf32, #tpu.memory_space<smem>>, %arg7: memref<16x128xf32, #tpu.memory_space<vmem>>) attributes {dimension_semantics = [#tpu.dimension_semantics<parallel>, #tpu.dimension_semantics<parallel>, #tpu.dimension_semantics<arbitrary>], iteration_bounds = array<i64: 1, 1, 1>, scalar_prefetch = 0 : i64, scratch_operands = 0 : i64, tpu.core_type = #tpu.core_type<tc>, window_params = [{transform_indices = @transform_0, window_bounds = array<i64: 16, 32>}, {transform_indices = @transform_1, window_bounds = array<i64: 128, 32>}, {transform_indices = @transform_2, window_bounds = array<i64: 1, 128>}, {transform_indices = @transform_3, window_bounds = array<i64: 2>}, {transform_indices = @transform_4, window_bounds = array<i64: 16, 128>}]} {
    %c0 = arith.constant 0 : index
    %c0_0 = arith.constant 0 : index
    %0 = vector.load %arg3[%c0, %c0_0] : memref<16x32xf32, #tpu.memory_space<vmem>>, vector<16x32xf32>
    %c0_1 = arith.constant 0 : index
    %c0_2 = arith.constant 0 : index
    %1 = vector.load %arg4[%c0_1, %c0_2] : memref<128x32xf32, #tpu.memory_space<vmem>>, vector<128x32xf32>
    %cst = arith.constant dense<0.000000e+00> : vector<16x128xf32>
    %2 = tpu.matmul %0, %1, %cst {dimension_numbers = #tpu.dot_dimension_numbers<[1], [1], [0], [0], [0, 0, 1, 0], [], []>} : vector<16x32xf32>, vector<128x32xf32>, vector<16x128xf32> -> vector<16x128xf32>
    %c0_3 = arith.constant 0 : index
    %c0_4 = arith.constant 0 : index
    %3 = vector.load %arg5[%c0_3, %c0_4] : memref<1x128xf32, #tpu.memory_space<vmem>>, vector<1x128xf32>
    %4 = vector.broadcast %3 : vector<1x128xf32> to vector<16x128xf32>
    %5 = arith.addf %2, %4 : vector<16x128xf32>
    %c1 = arith.constant 1 : index
    %6 = memref.load %arg6[%c1] : memref<2xf32, #tpu.memory_space<smem>>
    %7 = vector.broadcast %6 : f32 to vector<16x128xf32>
    %8 = arith.subf %5, %7 : vector<16x128xf32>
    %c0_5 = arith.constant 0 : index
    %9 = memref.load %arg6[%c0_5] : memref<2xf32, #tpu.memory_space<smem>>
    %10 = vector.broadcast %9 : f32 to vector<16x128xf32>
    %11 = arith.mulf %8, %10 : vector<16x128xf32>
    %12 = math.sin %11 : vector<16x128xf32>
    %c0_6 = arith.constant 0 : index
    %c0_7 = arith.constant 0 : index
    %13 = vector.load %arg7[%c0_6, %c0_7] : memref<16x128xf32, #tpu.memory_space<vmem>>, vector<16x128xf32>
    tpu.vector_store %arg7[%c0_6, %c0_7], %12 {strides = array<i32>} : memref<16x128xf32, #tpu.memory_space<vmem>>, vector<16x128xf32>,
    return
  }
  func.func @transform_0(%arg0: i32, %arg1: i32, %arg2: i32) -> (i32, i32) {
    %c0_i32 = arith.constant 0 : i32
    return %arg0, %arg2 : i32, i32
  }
  func.func @transform_1(%arg0: i32, %arg1: i32, %arg2: i32) -> (i32, i32) {
    %c0_i32 = arith.constant 0 : i32
    return %arg1, %arg2 : i32, i32
  }
  func.func @transform_2(%arg0: i32, %arg1: i32, %arg2: i32) -> (i32, i32) {
    %c0_i32 = arith.constant 0 : i32
    %c0_i32_0 = arith.constant 0 : i32
    return %c0_i32, %arg1 : i32, i32
  }
  func.func @transform_3(%arg0: i32, %arg1: i32, %arg2: i32) -> i32 {
    %c0_i32 = arith.constant 0 : i32
    %c0_i32_0 = arith.constant 0 : i32
    return %c0_i32 : i32
  }
  func.func @transform_4(%arg0: i32, %arg1: i32, %arg2: i32) -> (i32, i32) {
    %c0_i32 = arith.constant 0 : i32
    return %arg0, %arg1 : i32, i32
  }
}

</mosaic_0001>

<bundles_post_ra>
// kernel: tpu_custom_call.1
= control target key start
LH: loop header
LB: loop body
LE: loop exit
PB: predicated region body
PF: predicated region fallthrough
CT: control target
= control target key end

     0   :  { %9 = vsyncpa [#allocation4], 0  ;;  %s823_s0 = inlined_call_operand.vmem [shape: f32[16,32], index: 0, kind: input, shape index: {}]   ;;  %s824_s1 = inlined_call_operand.vmem [shape: f32[128,32], index: 1, kind: input, shape index: {}]   ;;  %s825_s2 = inlined_call_operand.vmem [shape: f32[1,128], index: 2, kind: input, shape index: {}]   ;;  %s826_s3 = inlined_call_operand.vmem [shape: f32[2], index: 3, kind: input, shape index: {}]   ;;  %s827_s4 = inlined_call_operand.hbm [shape: f32[16,128], index: 4, kind: output, shape index: {}]  }
   0x1   :  { %10 = vsyncpa [#allocation3], 0  ;;  %s23_s17 = sshll.u32 %s826_s3, 4  ;;  %s24_s17 = int_to_ptr.vmem [resolvable:$true] %s23_s17 }
   0x2   :  { %s576_s18 = scalar_lea.vmem %s24_s17, 16  ;;  %p581_p1 = scmp.lt.s32.totalorder %s24_s17, %s24_s17 }
   0x3   :  { %p577_p0 = scmp.ne.s32.totalorder %s24_s17, %s576_s18  ;;  %p582_p2 = scmp.lt.s32.totalorder %s576_s18, %s576_s18 }
   0x5   :  { %p583_p3 = por %p582_p2, %p581_p1 }
   0x7   :  { %p584_p4 = pnand %p583_p3, %p577_p0 }
   0x9   :  { %587 = shalt.err (!%p584_p4)
}
   0xa   :  { %s614_s19 = smov [#allocation2]  }
   0xb   :  { %26 = dma.vmem_to_smem %s24_s17, 16, %s614_s19, [#allocation4]  }
   0xc   :  { %610 = dma.done.wait [#allocation4], 16  }
   0xd   :  { %611 = vsyncadd [#allocation4], 4294967280 }
   0xe   :  { %30 = sfence }
   0xf   :  { %v33_v0 = vld [vmem:[%s824_s1] sm:$0xff]  ;;  %v34_v1 = vld [vmem:[%s824_s1 + $0x8] sm:$0xff]  ;;  %vm56_vm0 = vcmask 261120   ;;  %v35_v2 = vld [vmem:[%s824_s1 + $0x10] sm:$0xff]  ;;  %s440_s28 = sld [smem:[#allocation2 + $0x1]]  ;;  %s190_s29 = sld [smem:[#allocation2]] }
  0x10   :  { %v502_v3 = vpack.c.bf16 %v34_v1, %v33_v0  ;;  %vm663_vm1 = vmpackc.low %vm56_vm0, %vm56_vm0  ;;  %v36_v5 = vld [vmem:[%s824_s1 + $0x18] sm:$0xff]  ;;  %v31_v7 = vld [vmem:[%s823_s0] sm:$0xff]  ;;  %v615_v58 = vmov 683565275   ;;  %v616_v62 = vmov 2475754826  }
  0x11   :  { %v508_v6 = vpack.c.bf16 %v36_v5, %v35_v2  ;;  %v37_v8 = vld [vmem:[%s824_s1 + $0x20] sm:$0xff]  ;;  %v38_v9 = vld [vmem:[%s824_s1 + $0x28] sm:$0xff]  ;;  %499 = vmatprep.mubr.msk.f32.mxu0 %vm56_vm0, %v31_v7  ;;  %v39_v11 = vld [vmem:[%s824_s1 + $0x30] sm:$0xff]  ;;  %v617_v0 = vmov 2131351028  }
  0x12   :  { %504 = vmatprep.subr.msk.bf16.mxu0 %vm663_vm1, %v502_v3  ;;  %v514_v10 = vpack.c.bf16 %v38_v9, %v37_v8  ;;  %v40_v12 = vld [vmem:[%s824_s1 + $0x38] sm:$0xff]  ;;  %v41_v14 = vld [vmem:[%s824_s1 + $0x40] sm:$0xff]  ;;  %v42_v15 = vld [vmem:[%s824_s1 + $0x48] sm:$0xff]  ;;  %v618_v2 = vmov 2102212464  }
  0x13   :  { %507 = vmatpush3.bf16.xpose.msk.msra.mxu0 %vm663_vm1, %v502_v3  ;;  %v520_v13 = vpack.c.bf16 %v40_v12, %v39_v11  ;;  %v526_v16 = vpack.c.bf16 %v42_v15, %v41_v14  ;;  %v43_v17 = vld [vmem:[%s824_s1 + $0x50] sm:$0xff]  ;;  %v44_v18 = vld [vmem:[%s824_s1 + $0x58] sm:$0xff]  ;;  %v45_v20 = vld [vmem:[%s824_s1 + $0x60] sm:$0xff]  ;;  %v619_v4 = vmov 920167782  }
  0x14   :  { %510 = vmatprep.subr.msk.bf16.mxu0 %vm663_vm1, %v508_v6  ;;  %v532_v19 = vpack.c.bf16 %v44_v18, %v43_v17  ;;  %v46_v21 = vld [vmem:[%s824_s1 + $0x68] sm:$0xff]  ;;  %v47_v23 = vld [vmem:[%s824_s1 + $0x70] sm:$0xff]  ;;  %v48_v24 = vld [vmem:[%s824_s1 + $0x78] sm:$0xff]  ;;  %v620_v11 = vmov 1326507024  }
  0x15   :  { %v538_v22 = vpack.c.bf16 %v46_v21, %v45_v20  ;;  %v544_v25 = vpack.c.bf16 %v48_v24, %v47_v23  ;;  %v32_v26 = vld [vmem:[%s823_s0 + $0x8] sm:$0xff]  ;;  %v421_v27 = vld [vmem:[%s825_s2] ss:$0 sm:$0xff]  ;;  %v187_v29 = vstv %s440_s28  ;;  %v191_v32 = vstv %s190_s29  ;;  %s621_s0 = smov [#allocation5]  }
  0x16   :  { %s409_s2 = sshll.u32 %s621_s0, 4  ;;  %s410_s2 = int_to_ptr.vmem [resolvable:$true] %s409_s2 }
  0x17   :  { %s588_s5 = scalar_lea.vmem %s410_s2, 256  ;;  %p593_p6 = scmp.lt.s32.totalorder %s410_s2, %s410_s2 }
  0x18   :  { %p589_p5 = scmp.ne.s32.totalorder %s410_s2, %s588_s5  ;;  %p594_p7 = scmp.lt.s32.totalorder %s588_s5, %s588_s5 }
  0x1a   :  { %p595_p8 = por %p594_p7, %p593_p6 }
  0x1b   :  { %513 = vmatpush3.bf16.xpose.msk.msra.mxu0 %vm663_vm1, %v508_v6 }
  0x1c   :  { %516 = vmatprep.subr.msk.bf16.mxu0 %vm663_vm1, %v514_v10  ;;  %p596_p9 = pnand %p595_p8, %p589_p5 }
  0x23   :  { %519 = vmatpush3.bf16.xpose.msk.msra.mxu0 %vm663_vm1, %v514_v10 }
  0x24   :  { %522 = vmatprep.subr.msk.bf16.mxu0 %vm663_vm1, %v520_v13 }
  0x2b   :  { %525 = vmatpush3.bf16.xpose.msk.msra.mxu0 %vm663_vm1, %v520_v13 }
  0x2c   :  { %528 = vmatprep.subr.msk.bf16.mxu0 %vm663_vm1, %v526_v16 }
  0x33   :  { %531 = vmatpush3.bf16.xpose.msk.msra.mxu0 %vm663_vm1, %v526_v16 }
  0x34   :  { %534 = vmatprep.subr.msk.bf16.mxu0 %vm663_vm1, %v532_v19 }
  0x3b   :  { %537 = vmatpush3.bf16.xpose.msk.msra.mxu0 %vm663_vm1, %v532_v19 }
  0x3c   :  { %540 = vmatprep.subr.msk.bf16.mxu0 %vm663_vm1, %v538_v22 }
  0x43   :  { %543 = vmatpush3.bf16.xpose.msk.msra.mxu0 %vm663_vm1, %v538_v22 }
  0x44   :  { %546 = vmatprep.subr.msk.bf16.mxu0 %vm663_vm1, %v544_v25 }
  0x4b   :  { %549 = vmatpush3.bf16.xpose.msk.msra.mxu0 %vm663_vm1, %v544_v25 }
  0x52   :  { %500 = vmatmul.mubr.msk.f32.vlgmr.msra.gmra.mrb[0].mxu0 %vm56_vm0, %v32_v26 }
 0x125   :  { %v501_v28 = vpop.f32.mrb[0].mxu0 }
 0x126   :  { %v183_v30 = vadd.f32 %v501_v28, %v421_v27  ;;  %v177_v31 = vpop.f32.mrb[1].mxu0 }
 0x127   :  { %v178_v33 = vadd.f32 %v421_v27, %v177_v31 }
 0x128   :  { %v189_v34 = vsub.f32 %v183_v30, %v187_v29 }
 0x129   :  { %v188_v35 = vsub.f32 %v178_v33, %v187_v29 }
 0x12a   :  { %v749_v36 = vmul.f32 %v191_v32, %v189_v34 }
 0x12b   :  { %v751_v37 = vmul.f32 %v191_v32, %v188_v35 }
 0x12c   :  { %v298_v38 = vand.u32 2147483647, %v749_v36  ;;  %v301_v39 = vand.u32 2139095040, %v749_v36  ;;  %vm300_vm0 = vcmp.lt.s32.totalorder %v749_v36, 0 }
 0x12d   :  { %v197_v40 = vand.u32 2139095040, %v751_v37  ;;  %v194_v43 = vand.u32 2147483647, %v751_v37 }
 0x12e   :  { %v302_v41 = vshrl.u32 %v301_v39, 23  ;;  %v305_v42 = vand.u32 8388607, %v298_v38  ;;  %vm299_vm1 = vcmp.le.f32.partialorder %v298_v38, 0.7853982 }
 0x12f   :  { %v198_v44 = vshrl.u32 %v197_v40, 23  ;;  %v761_v49 = vand.u32 8388607, %v194_v43 }
 0x130   :  { %v445_v45 = vadd.s32 4294967169, %v302_v41  ;;  %v306_v48 = vor.u32 8388608, %v305_v42 }
 0x131   :  { %v441_v46 = vadd.s32 4294967169, %v198_v44  ;;  %v202_v56 = vor.u32 8388608, %v761_v49 }
 0x132   :  { %v308_v47 = vadd.s32 1, %v445_v45  ;;  %v763_v55 = vshll.u32 %v306_v48, 8 }
 0x133   :  { %v204_v50 = vadd.s32 1, %v441_v46 }
 0x134   :  { %vm309_vm2 = vcmp.gt.s32.totalorder %v308_v47, 0 }
 0x135   :  { %v310_v51 = vsel %vm309_vm2, %v308_v47, 0  ;;  %vm205_vm3 = vcmp.gt.s32.totalorder %v204_v50, 0  ;;  %vm196_vm2 = vcmp.lt.s32.totalorder %v751_v37, 0 }
 0x136   :  { %v311_v52 = vshrl.u32 %v310_v51, 5  ;;  %v312_v53 = vand.u32 31, %v310_v51  ;;  %v206_v54 = vsel %vm205_vm3, %v204_v50, 0  ;;  %v242_v50 = vshll.u32 %v202_v56, 8 }
 0x137   :  { %v766_v60 = vshrl.u32 %v206_v54, 5  ;;  %v208_v61 = vand.u32 31, %v206_v54  ;;  %vm195_vm3 = vcmp.le.f32.partialorder %v194_v43, 0.7853982 }
 0x138   :  { %v313_v57 = vsub.s32 32, %v312_v53  ;;  %v315_v59 = vshll.u32 %v615_v58, %v312_v53  ;;  %v318_v63 = vshll.u32 %v616_v62, %v312_v53  ;;  %v321_v1 = vshll.u32 %v617_v0, %v312_v53 }
 0x139   :  { %v324_v3 = vshll.u32 %v618_v2, %v312_v53  ;;  %v327_v5 = vshll.u32 %v619_v4, %v312_v53  ;;  %vm330_vm4 = vcmp.lt.s32.totalorder %v311_v52, 1  ;;  %vm331_vm5 = vcmp.lt.s32.totalorder %v311_v52, 2 }
 0x13a   :  { %v316_v6 = vshrl.u32 %v616_v62, %v313_v57  ;;  %v319_v7 = vshrl.u32 %v617_v0, %v313_v57  ;;  %v322_v8 = vshrl.u32 %v618_v2, %v313_v57  ;;  %v314_v9 = vshrl.u32 %v615_v58, %v313_v57 }
 0x13b   :  { %v325_v10 = vshrl.u32 %v619_v4, %v313_v57  ;;  %v328_v12 = vshrl.u32 %v620_v11, %v313_v57  ;;  %v209_v16 = vsub.s32 32, %v208_v61  ;;  %vm332_vm6 = vcmp.lt.s32.totalorder %v311_v52, 3 }
 0x13c   :  { %v317_v13 = vor.u32 %v316_v6, %v315_v59  ;;  %v320_v14 = vor.u32 %v319_v7, %v318_v63  ;;  %v323_v15 = vor.u32 %v322_v8, %v321_v1  ;;  %vm333_vm7 = vcmp.lt.s32.totalorder %v311_v52, 4 }
 0x13d   :  { %v326_v17 = vor.u32 %v325_v10, %v324_v3  ;;  %v329_v18 = vor.u32 %v328_v12, %v327_v5  ;;  %v211_v26 = vshll.u32 %v615_v58, %v208_v61  ;;  %v212_v29 = vshrl.u32 %v616_v62, %v209_v16 }
 0x13e   :  { %v334_v19 = vsel %vm330_vm4, %v314_v9, %v317_v13  ;;  %v335_v20 = vsel %vm333_vm7, %v323_v15, 2102212464  ;;  %v338_v21 = vsel %vm330_vm4, %v317_v13, %v320_v14  ;;  %v342_v22 = vsel %vm330_vm4, %v320_v14, %v323_v15 }
 0x13f   :  { %v336_v23 = vsel %vm332_vm6, %v320_v14, %v335_v20  ;;  %v339_v24 = vsel %vm333_vm7, %v326_v17, 920167782  ;;  %v343_v25 = vsel %vm333_vm7, %v329_v18, 1326507024  ;;  %v214_v30 = vshll.u32 %v616_v62, %v208_v61 }
 0x140   :  { %v340_v27 = vsel %vm332_vm6, %v323_v15, %v339_v24  ;;  %v344_v28 = vsel %vm332_vm6, %v326_v17, %v343_v25  ;;  %v337_v31 = vsel %vm331_vm5, %v334_v19, %v336_v23  ;;  %v215_v34 = vshrl.u32 %v617_v0, %v209_v16 }
 0x141   :  { %v341_v32 = vsel %vm331_vm5, %v338_v21, %v340_v27  ;;  %v345_v33 = vsel %vm331_vm5, %v342_v22, %v344_v28  ;;  %v213_v42 = vor.u32 %v212_v29, %v211_v26  ;;  %v217_v45 = vshll.u32 %v617_v0, %v208_v61 }
 0x142   :  { %v775_v35 = vmul.u32.u64.low %v763_v55, %v345_v33  ;;  %v776_v39 = vmul.u32.u64.high %v763_v55, %v345_v33, %v775_v35  ;;  %v779_v40 = vmul.u32.u64.low %v763_v55, %v341_v32  ;;  %v780_v41 = vmul.u32.u64.high %v763_v55, %v341_v32, %v779_v40 }
 0x143   :  { %v216_v44 = vor.u32 %v215_v34, %v214_v30  ;;  %v218_v46 = vshrl.u32 %v618_v2, %v209_v16  ;;  %v220_v47 = vshll.u32 %v618_v2, %v208_v61  ;;  %v221_v48 = vshrl.u32 %v619_v4, %v209_v16 }
 0x144   :  { %v224_v49 = vshrl.u32 %v620_v11, %v209_v16  ;;  %v353_v51 = vmul.u32 %v763_v55, %v337_v31  ;;  %v210_v52 = vshrl.u32 %v615_v58, %v209_v16  ;;  %v223_v54 = vshll.u32 %v619_v4, %v208_v61 }
 0x145   :  { %v219_v53 = vor.u32 %v218_v46, %v217_v45  ;;  %vm355_vm8 = vc.u32 %v776_v39, %v779_v40  ;;  %v356_v57 = vadd.s32 1, %v780_v41  ;;  %v222_v59 = vor.u32 %v221_v48, %v220_v47 }
 0x146   :  { %vm226_vm9 = vcmp.lt.s32.totalorder %v766_v60, 1  ;;  %v225_v62 = vor.u32 %v224_v49, %v223_v54  ;;  %vm228_vm10 = vcmp.lt.s32.totalorder %v766_v60, 3  ;;  %vm229_vm11 = vcmp.lt.s32.totalorder %v766_v60, 4 }
 0x147   :  { %v234_v63 = vsel %vm226_vm9, %v213_v42, %v216_v44  ;;  %v357_v56 = vsel %vm355_vm8, %v356_v57, %v780_v41  ;;  %v231_v0 = vsel %vm229_vm11, %v219_v53, 2102212464  ;;  %v235_v55 = vsel %vm229_vm11, %v222_v59, 920167782 }
 0x148   :  { %v238_v58 = vsel %vm226_vm9, %v216_v44, %v219_v53  ;;  %v358_v1 = vadd.s32 %v357_v56, %v353_v51  ;;  %vm227_vm12 = vcmp.lt.s32.totalorder %v766_v60, 2  ;;  %v236_v61 = vsel %vm228_vm10, %v219_v53, %v235_v55 }
 0x149   :  { %v239_v2 = vsel %vm229_vm11, %v225_v62, 1326507024  ;;  %v230_v3 = vsel %vm226_vm9, %v210_v52, %v213_v42  ;;  %v232_v4 = vsel %vm228_vm10, %v216_v44, %v231_v0  ;;  %v237_v5 = vsel %vm227_vm12, %v234_v63, %v236_v61 }
 0x14a   :  { %v240_v6 = vsel %vm228_vm10, %v222_v59, %v239_v2  ;;  %v359_v7 = vadd.s32 536870912, %v358_v1  ;;  %v790_v9 = vmul.u32.u64.low %v242_v50, %v237_v5  ;;  %v791_v10 = vmul.u32.u64.high %v242_v50, %v237_v5, %v790_v9 }
 0x14b   :  { %v241_v8 = vsel %vm227_vm12, %v238_v58, %v240_v6  ;;  %v233_v14 = vsel %vm227_vm12, %v230_v3, %v232_v4  ;;  %v354_v30 = vadd.s32 %v779_v40, %v776_v39  ;;  %vm390_vm7 = vweird.f32 %v749_v36 }
 0x14c   :  { %v793_v11 = vmul.u32.u64.low %v242_v50, %v241_v8  ;;  %v794_v12 = vmul.u32.u64.high %v242_v50, %v241_v8, %v793_v11  ;;  %v360_v13 = vshrl.u32 %v359_v7, 30  ;;  %v252_v16 = vadd.s32 1, %v791_v10 }
 0x14d   :  { %v249_v60 = vmul.u32 %v242_v50, %v233_v14  ;;  %vm286_vm11 = vweird.f32 %v751_v37 }
 0x14e   :  { %v361_v15 = vshll.u32 %v360_v13, 30  ;;  %vm251_vm13 = vc.u32 %v794_v12, %v790_v9  ;;  %v250_v51 = vadd.s32 %v790_v9, %v794_v12  ;;  %v384_v40 = vsub.s32 4, %v360_v13 }
 0x14f   :  { %v253_v18 = vsel %vm251_vm13, %v252_v16, %v791_v10 }
 0x150   :  { %v362_v17 = vsub.s32 %v358_v1, %v361_v15  ;;  %v254_v19 = vadd.s32 %v253_v18, %v249_v60  ;;  %v385_v55 = vsel %vm300_vm0, %v384_v40, %v360_v13 }
 0x151   :  { %v387_v3 = vsel %vm299_vm1, 0, %v385_v55 }
 0x152   :  { %v364_v20 = vsub.s32 0, %v362_v17  ;;  %v255_v21 = vadd.s32 536870912, %v254_v19  ;;  %v391_v6 = vadd.s32 3, %v387_v3 }
 0x154   :  { %v446_v22 = vmin.u32 %v364_v20, %v362_v17  ;;  %v256_v23 = vshrl.u32 %v255_v21, 30  ;;  %v392_v10 = vand.u32 3, %v391_v6 }
 0x156   :  { %v366_v24 = vclz %v446_v22  ;;  %v257_v25 = vshll.u32 %v256_v23, 30  ;;  %v280_v5 = vsub.s32 4, %v256_v23  ;;  %vm397_vm4 = vcmp.eq.s32.totalorder %v392_v10, 2 }
 0x157   :  { %vm394_vm5 = vcmp.eq.s32.totalorder %v392_v10, 0  ;;  %vm393_vm6 = vcmp.lt.s32.totalorder %v392_v10, 2 }
 0x158   :  { %v447_v26 = vadd.s32 4294967294, %v366_v24  ;;  %v258_v27 = vsub.s32 %v254_v19, %v257_v25  ;;  %v281_v38 = vsel %vm196_vm2, %v280_v5, %v256_v23 }
 0x159   :  { %v283_v12 = vsel %vm195_vm3, 0, %v281_v38 }
 0x15a   :  { %vm448_vm14 = vcmp.lt.s32.totalorder %v447_v26, 0  ;;  %v260_v29 = vsub.s32 0, %v258_v27  ;;  %v287_v16 = vadd.s32 3, %v283_v12 }
 0x15b   :  { %v369_v28 = vsel %vm448_vm14, 0, %v447_v26 }
 0x15c   :  { %v370_v31 = vsub.s32 32, %v369_v28  ;;  %v374_v32 = vsub.s32 4294967266, %v369_v28  ;;  %v442_v33 = vmin.u32 %v260_v29, %v258_v27  ;;  %v371_v34 = vshll.u32 %v362_v17, %v369_v28 }
 0x15d   :  { %v288_v19 = vand.u32 3, %v287_v16 }
 0x15e   :  { %v372_v35 = vshrl.u32 %v354_v30, %v370_v31  ;;  %v375_v41 = vadd.s32 127, %v374_v32  ;;  %v262_v42 = vclz %v442_v33 }
 0x15f   :  { %vm293_vm8 = vcmp.eq.s32.totalorder %v288_v19, 2  ;;  %vm290_vm9 = vcmp.eq.s32.totalorder %v288_v19, 0  ;;  %vm289_vm10 = vcmp.lt.s32.totalorder %v288_v19, 2 }
 0x160   :  { %v373_v44 = vor.u32 %v372_v35, %v371_v34  ;;  %v376_v45 = vshll.u32 %v375_v41, 23  ;;  %v443_v46 = vadd.s32 4294967294, %v262_v42 }
 0x162   :  { %v377_v47 = vor.u32 4788187, %v376_v45  ;;  %vm444_vm15 = vcmp.lt.s32.totalorder %v443_v46, 0  ;;  %v380_v49 = vcvt.s32.f32 %v373_v44 }
 0x163   :  { %v265_v50 = vsel %vm444_vm15, 0, %v443_v46 }
 0x164   :  { %v378_v48 = vand.u32 2147483647, %v377_v47  ;;  %v266_v52 = vsub.s32 32, %v265_v50  ;;  %v270_v53 = vsub.s32 4294967266, %v265_v50  ;;  %v267_v54 = vshll.u32 %v258_v27, %v265_v50 }
 0x166   :  { %v381_v39 = vmul.f32 %v380_v49, %v378_v48  ;;  %v268_v57 = vshrl.u32 %v250_v51, %v266_v52  ;;  %v271_v59 = vadd.s32 127, %v270_v53 }
 0x168   :  { %v382_v62 = vxor.u32 2147483648, %v381_v39  ;;  %v269_v63 = vor.u32 %v268_v57, %v267_v54  ;;  %v272_v56 = vshll.u32 %v271_v59, 23 }
 0x16a   :  { %v383_v0 = vsel %vm300_vm0, %v382_v62, %v381_v39  ;;  %v273_v58 = vor.u32 4788187, %v272_v56  ;;  %v276_v2 = vcvt.s32.f32 %v269_v63 }
 0x16b   :  { %v386_v1 = vsel %vm299_vm1, %v749_v36, %v383_v0 }
 0x16c   :  { %568 = vcosq.f32 %v386_v1  ;;  %v274_v61 = vand.u32 2147483647, %v273_v58 }
 0x16d   :  { %570 = vsinq.f32 %v386_v1 }
 0x16e   :  { %v277_v4 = vmul.f32 %v276_v2, %v274_v61 }
 0x170   :  { %v278_v7 = vxor.u32 2147483648, %v277_v4 }
 0x172   :  { %v279_v8 = vsel %vm196_vm2, %v278_v7, %v277_v4 }
 0x173   :  { %v282_v9 = vsel %vm195_vm3, %v751_v37, %v279_v8 }
 0x174   :  { %572 = vcosq.f32 %v282_v9 }
 0x175   :  { %574 = vsinq.f32 %v282_v9 }
 0x176   :  { %v569_v11 = vpop.eup %568 }
 0x177   :  { %v571_v13 = vpop.eup %570  ;;  %v398_v14 = vxor.u32 2147483648, %v569_v11 }
 0x178   :  { %v395_v15 = vxor.u32 2147483648, %v571_v13 }
 0x179   :  { %v399_v60 = vsel %vm397_vm4, %v398_v14, %v571_v13 }
 0x17a   :  { %v396_v17 = vsel %vm394_vm5, %v569_v11, %v395_v15 }
 0x17b   :  { %v400_v43 = vsel %vm393_vm6, %v396_v17, %v399_v60 }
 0x17c   :  { %v401_v18 = vsel %vm390_vm7, nan, %v400_v43 }
 0x17d   :  { %403 = vst [vmem:[#allocation5 + $0x8] sm:$0xff] %v401_v18 }
 0x17e   :  { %v573_v20 = vpop.eup %572 }
 0x17f   :  { %v575_v21 = vpop.eup %574  ;;  %v294_v22 = vxor.u32 2147483648, %v573_v20 }
 0x180   :  { %v291_v23 = vxor.u32 2147483648, %v575_v21 }
 0x181   :  { %v295_v24 = vsel %vm293_vm8, %v294_v22, %v575_v21 }
 0x182   :  { %v292_v25 = vsel %vm290_vm9, %v573_v20, %v291_v23 }
 0x183   :  { %v296_v26 = vsel %vm289_vm10, %v292_v25, %v295_v24 }
 0x184   :  { %v297_v36 = vsel %vm286_vm11, nan, %v296_v26 }
 0x185   :  { %402 = vst [vmem:[#allocation5] sm:$0xff] %v297_v36 }
 0x186   :  { %599 = shalt.err (!%p596_p9)
}
 0x187   :  { %s600_s8 = scalar_lea.hbm %s827_s4, 256 }
 0x188   :  { %p601_p10 = scmp.ne.s32.totalorder %s827_s4, %s600_s8  ;;  %p604_p11 = scmp.lt.u32.totalorder %s600_s8, %s827_s4 }
 0x18a   :  { %p606_p12 = pnand %p604_p11, %p601_p10 }
 0x18c   :  { %609 = shalt.err (!%p606_p12)
}
 0x18d   :  { %s622_s13 = smov 128   ;;  %s623_s14 = smov 8  }
 0x18e   :  { %415 = dma.vmem_to_hbm [thread:$0]  %s410_s2, 256, %s827_s4, [#allocation3], %s622_s13, %s622_s13, %s623_s14  }
 0x18f   :  { %612 = dma.done.wait [#allocation3], 256  }
 0x190   :  { %613 = vsyncadd [#allocation3], 4294967040 }
 0x191   :  { %419 = vsyncpa [#allocation3], 1 }
 0x192   :  { %420 = vsyncpa [#allocation4], 1 }

</bundles_post_ra>
